<compile_context>
chip_gen: v7x
topology: tpu7x:2x2x1
jax: 0.10.0
libtpu: 0.0.40
codegen_flags: <defaults>
</compile_context>

<pallas_src>
import functools
import math

import jax
import jax.numpy as jnp
from jax.experimental import pallas as pl
from jax.experimental.pallas import tpu as pltpu


_TARGET_BLOCK_BYTES = 4 * 1024 * 1024   # ~4 MiB x block; double-buffered ~8 MiB VMEM
_MAX_HW_TILE = 8192                     # cap on lane tile (keeps DMA rows <= 32 KiB f32)


def _round_up(x, m):
    return (x + m - 1) // m * m


def _round_down(x, m):
    return x // m * m


def _cdiv(a, b):
    return -(-a // b)


def _pool_sum_kernel(x_ref, o_ref, acc_ref, *, hw_len, hw_tile,
                     tiles_per_split, full_tiles, ragged):
    """Streaming per-(sample, channel) spatial sum.

    x_ref:   (rows, hw_tile)  current activation tile (rows = n_tile * C)
    o_ref:   (rows, 1) f32    partial spatial sum for this (batch tile, split)
    acc_ref: (rows, 1) f32    running accumulator (VMEM scratch)
    """
    hw = pl.program_id(2)

    @pl.when(hw == 0)
    def _init():
        acc_ref[...] = jnp.zeros_like(acc_ref)

    if not ragged:
        # Steady state: plain upcast + lane reduce + add (no masking code at all).
        acc_ref[...] += jnp.sum(x_ref[...].astype(jnp.float32), axis=-1,
                                keepdims=True)
    else:
        split = pl.program_id(1)
        gt = split * tiles_per_split + hw            # global H*W tile index

        @pl.when(gt < full_tiles)                    # fully-valid tile: no masking
        def _full():
            acc_ref[...] += jnp.sum(x_ref[...].astype(jnp.float32), axis=-1,
                                    keepdims=True)

        @pl.when(gt >= full_tiles)                   # ragged last tile / padded split tile
        def _edge():
            valid = hw_len - gt * hw_tile            # <= 0 for fully out-of-range tiles
            lane = jax.lax.broadcasted_iota(jnp.int32, (1, hw_tile), 1)
            x = jnp.where(lane < valid, x_ref[...].astype(jnp.float32), 0.0)
            acc_ref[...] += jnp.sum(x, axis=-1, keepdims=True)

    @pl.when(hw == pl.num_programs(2) - 1)
    def _finalize():
        o_ref[...] = acc_ref[...]


def _choose_tiling(N, C, HW, itemsize):
    """Pick (n_tile, hw_tile) giving ~_TARGET_BLOCK_BYTES blocks with a valid layout."""
    hw_ceil = _round_up(HW, 128)
    target_elems = max(_TARGET_BLOCK_BYTES // itemsize, 8 * 128)
    # Sublane packing granularity of the input dtype (f32: 8, bf16: 16, int8/fp8: 32).
    sublanes = max(8, 32 // itemsize)
    # Samples per batch tile must be a multiple of g so rows = n_tile*C is
    # sublane-aligned (a tile covering the whole batch is exempt from the rule).
    g = sublanes // math.gcd(sublanes, C)

    hw_tile = min(hw_ceil, _MAX_HW_TILE)
    if N < 2 * g:
        n_tile = N                                   # single (full-dim) batch tile
    else:
        budget = max(target_elems // (hw_tile * C), 1)
        n_tile = max(g, _round_down(budget, g))
        n_tile = min(n_tile, _round_down(N - 1, g))  # keep >= 2 batch tiles (megacore)
    rows = n_tile * C
    if rows * hw_tile > 2 * target_elems:            # huge-C fallback: shrink lane tile
        hw_tile = max(128, _round_down((2 * target_elems) // rows, 128))
        hw_tile = min(hw_tile, hw_ceil)
    return n_tile, hw_tile


def router_forward(x_nchw, weight, bias, *, n_tile=None, hw_tile=None):
    """CondConv Router forward.  x: (N,C,H,W); weight: (E,C,1,1); bias: (E,) -> (N,E)."""
    N, C, H, W = x_nchw.shape
    E = weight.shape[0]
    HW = H * W
    itemsize = jnp.dtype(x_nchw.dtype).itemsize

    auto_n, auto_hw = _choose_tiling(N, C, HW, itemsize)
    n_tile = auto_n if n_tile is None else min(n_tile, N)
    hw_tile = auto_hw if hw_tile is None else min(_round_up(hw_tile, 128),
                                                  _round_up(HW, 128))
    rows = n_tile * C
    sublanes = max(8, 32 // itemsize)
    assert rows == N * C or rows % sublanes == 0, (
        "n_tile*C must be sublane-aligned (or cover the whole batch)")

    n_batch_tiles = _cdiv(N, n_tile)
    num_tiles = _cdiv(HW, hw_tile)                   # total H*W tiles
    # Megacore (v7x): if there is only one batch tile, split the reduction in two
    # parallel partial sums so both TensorCores get work; harmless on 1-TC chips.
    n_splits = 2 if (n_batch_tiles == 1 and num_tiles >= 2) else 1
    tiles_per_split = _cdiv(num_tiles, n_splits)

    full_tiles = HW // hw_tile                       # tiles with no ragged lanes
    ragged = (HW % hw_tile != 0) or (num_tiles % n_splits != 0)

    # Lane-dense (N*C, H*W) view of x: a pure reshape — no pad, no extra HBM copy.
    x2d = x_nchw.reshape(N * C, HW)

    if num_tiles % n_splits == 0:
        x_index = lambda n, s, hw: (n, s * tiles_per_split + hw)
    else:
        # Clamp out-of-range tile indices of the padded split; those tiles are
        # fully masked to zero inside the kernel, so re-reading tile num_tiles-1
        # is correctness-neutral.
        x_index = lambda n, s, hw: (n, jnp.minimum(s * tiles_per_split + hw,
                                                   num_tiles - 1))

    kernel = functools.partial(
        _pool_sum_kernel, hw_len=HW, hw_tile=hw_tile,
        tiles_per_split=tiles_per_split, full_tiles=full_tiles, ragged=ragged)

    partial_sums = pl.pallas_call(
        kernel,
        out_shape=jax.ShapeDtypeStruct((n_splits, n_batch_tiles * rows, 1),
                                       jnp.float32),
        grid_spec=pltpu.PrefetchScalarGridSpec(
            num_scalar_prefetch=0,
            grid=(n_batch_tiles, n_splits, tiles_per_split),   # reduction axis last
            in_specs=[pl.BlockSpec((rows, hw_tile), x_index)],
            out_specs=pl.BlockSpec((None, rows, 1), lambda n, s, hw: (s, n, 0)),
            scratch_shapes=[pltpu.VMEM((rows, 1), jnp.float32)],
        ),
        compiler_params=pltpu.CompilerParams(
            dimension_semantics=("parallel", "parallel", "arbitrary"),
            vmem_limit_bytes=32 * 1024 * 1024),
    )(x2d)

    # Tiny epilogue in plain XLA (per perf review): combine split partial sums,
    # divide by the true H*W, project C->E (1x1 conv), add bias, sigmoid.
    pooled = partial_sums.sum(axis=0)[: N * C, 0].reshape(N, C) * (1.0 / HW)
    w_ce = weight.reshape(E, C).T.astype(jnp.float32)                # (C, E)
    logits = pooled @ w_ce + bias.astype(jnp.float32)[None, :]
    out_dtype = jnp.result_type(x_nchw.dtype, weight.dtype)
    return jax.nn.sigmoid(logits).astype(out_dtype)


def router_reference(x_nchw, weight, bias):
    """Pure-JAX reference matching the PyTorch module semantics (f32 math)."""
    pooled = jnp.mean(x_nchw.astype(jnp.float32), axis=(2, 3))       # (N, C)
    w = weight.reshape(weight.shape[0], -1).T.astype(jnp.float32)    # (C, E)
    logits = pooled @ w + bias.astype(jnp.float32)
    out_dtype = jnp.result_type(x_nchw.dtype, weight.dtype)
    return jax.nn.sigmoid(logits).astype(out_dtype)


if __name__ == "__main__":
    in_dim, n_experts = 4, 8
    key = jax.random.PRNGKey(0)
    kx1, kx2, kx3, kw, kb = jax.random.split(key, 5)

    weight = jax.random.normal(kw, (n_experts, in_dim, 1, 1), jnp.float32) * 0.1
    bias = jax.random.normal(kb, (n_experts,), jnp.float32) * 0.1

    def check(x, **tile_kwargs):
        out = jax.block_until_ready(router_forward(x, weight, bias, **tile_kwargs))
        ref = router_reference(x, weight, bias)
        assert out.shape == ref.shape, (out.shape, ref.shape)
        err = jnp.max(jnp.abs(out.astype(jnp.float32) - ref.astype(jnp.float32)))
        assert jnp.allclose(out, ref, atol=1e-5, rtol=1e-5), f"mismatch, max err={err}"

    # 1) Module's nominal shape (N=2, C=4, H=W=16): single block, auto tiling.
    x1 = jax.random.normal(kx1, (2, in_dim, 16, 16), jnp.float32)
    check(x1)

    # 2) Small batch + ragged H*W (19*19 = 361) with forced small tiles: exercises
    #    the 2-way parallel reduction split (v7x megacore path), the clamped
    #    padded-split tile and the ragged-lane mask.
    x2 = jax.random.normal(kx2, (2, in_dim, 19, 19), jnp.float32)
    check(x2, hw_tile=128)

    # 3) bf16 input, multiple (ragged) batch tiles, multi-step H*W reduction.
    x3 = jax.random.normal(kx3, (20, in_dim, 16, 16), jnp.float32).astype(jnp.bfloat16)
    check(x3, n_tile=8, hw_tile=128)

    print("KERNEL_OK")
</pallas_src>

<mosaic_0001>
module attributes {stable_mosaic.version = 11 : i64} {
  func.func @_pool_sum_kernel(%arg0: i32, %arg1: i32, %arg2: i32, %arg3: memref<8x256xf32, #tpu.memory_space<vmem>>, %arg4: memref<1x8x1xf32, #tpu.memory_space<vmem>>, %arg5: memref<8x1xf32, #tpu.memory_space<vmem>>) attributes {dimension_semantics = [#tpu.dimension_semantics<parallel>, #tpu.dimension_semantics<parallel>, #tpu.dimension_semantics<arbitrary>], iteration_bounds = array<i64: 1, 1, 1>, scalar_prefetch = 0 : i64, scratch_operands = 1 : i64, tpu.core_type = #tpu.core_type<tc>, window_params = [{transform_indices = @transform_0, window_bounds = array<i64: 8, 256>}, {transform_indices = @transform_1, window_bounds = array<i64: 1, 8, 1>}]} {
    %c0_i32 = arith.constant 0 : i32
    %0 = arith.cmpi eq, %arg2, %c0_i32 : i32
    %1 = arith.extui %0 : i1 to i32
    %c0_i32_0 = arith.constant 0 : i32
    %2 = arith.cmpi ne, %1, %c0_i32_0 : i32
    scf.if %2 {
      %cst_8 = arith.constant 0.000000e+00 : f32
      %12 = vector.broadcast %cst_8 : f32 to vector<8x1xf32>
      %c0_9 = arith.constant 0 : index
      %c0_10 = arith.constant 0 : index
      %13 = vector.load %arg5[%c0_9, %c0_10] : memref<8x1xf32, #tpu.memory_space<vmem>>, vector<8x1xf32>
      tpu.vector_store %arg5[%c0_9, %c0_10], %12 {strides = array<i32>} : memref<8x1xf32, #tpu.memory_space<vmem>>, vector<8x1xf32>,
    } else {
    }
    %c0 = arith.constant 0 : index
    %c0_1 = arith.constant 0 : index
    %3 = vector.load %arg5[%c0, %c0_1] : memref<8x1xf32, #tpu.memory_space<vmem>>, vector<8x1xf32>
    %c0_2 = arith.constant 0 : index
    %c0_3 = arith.constant 0 : index
    %4 = vector.load %arg3[%c0_2, %c0_3] : memref<8x256xf32, #tpu.memory_space<vmem>>, vector<8x256xf32>
    %cst = arith.constant dense<0.000000e+00> : vector<8xf32>
    %5 = vector.multi_reduction <add>, %4, %cst [1] : vector<8x256xf32> to vector<8xf32>
    %6 = vector.shape_cast %5 : vector<8xf32> to vector<8x1xf32>
    %7 = arith.addf %3, %6 : vector<8x1xf32>
    %c0_4 = arith.constant 0 : index
    %c0_5 = arith.constant 0 : index
    %8 = vector.load %arg5[%c0_4, %c0_5] : memref<8x1xf32, #tpu.memory_space<vmem>>, vector<8x1xf32>
    tpu.vector_store %arg5[%c0_4, %c0_5], %7 {strides = array<i32>} : memref<8x1xf32, #tpu.memory_space<vmem>>, vector<8x1xf32>,
    %c0_i32_6 = arith.constant 0 : i32
    %9 = arith.cmpi eq, %arg2, %c0_i32_6 : i32
    %10 = arith.extui %9 : i1 to i32
    %c0_i32_7 = arith.constant 0 : i32
    %11 = arith.cmpi ne, %10, %c0_i32_7 : i32
    scf.if %11 {
      %c0_8 = arith.constant 0 : index
      %c0_9 = arith.constant 0 : index
      %12 = vector.load %arg5[%c0_8, %c0_9] : memref<8x1xf32, #tpu.memory_space<vmem>>, vector<8x1xf32>
      %c0_10 = arith.constant 0 : index
      %c0_11 = arith.constant 0 : index
      %c0_12 = arith.constant 0 : index
      %13 = vector.load %arg4[%c0_10, %c0_11, %c0_12] : memref<1x8x1xf32, #tpu.memory_space<vmem>>, vector<1x8x1xf32>
      %14 = vector.shape_cast %13 : vector<1x8x1xf32> to vector<8x1xf32>
      %15 = vector.shape_cast %12 : vector<8x1xf32> to vector<1x8x1xf32>
      tpu.vector_store %arg4[%c0_10, %c0_11, %c0_12], %15 {strides = array<i32>} : memref<1x8x1xf32, #tpu.memory_space<vmem>>, vector<1x8x1xf32>,
    } else {
    }
    return
  }
  func.func @transform_0(%arg0: i32, %arg1: i32, %arg2: i32) -> (i32, i32) {
    %c1_i32 = arith.constant 1 : i32
    %0 = arith.muli %arg1, %c1_i32 : i32
    %1 = arith.addi %0, %arg2 : i32
    %c0_i32 = arith.constant 0 : i32
    return %arg0, %1 : i32, i32
  }
  func.func @transform_1(%arg0: i32, %arg1: i32, %arg2: i32) -> (i32, i32, i32) {
    %c0_i32 = arith.constant 0 : i32
    %c0_i32_0 = arith.constant 0 : i32
    return %arg1, %arg0, %c0_i32 : i32, i32, i32
  }
}

</mosaic_0001>

<bundles_post_ra>
// kernel: tpu_custom_call.1
= control target key start
LH: loop header
LB: loop body
LE: loop exit
PB: predicated region body
PF: predicated region fallthrough
CT: control target
= control target key end

     0   :  { %6 = vsyncpa [#allocation4], 0  ;;  %s77_s6 = smov [#allocation3]   ;;  %s104_s0 = inlined_call_operand.hbm [shape: f32[8,256], index: 0, kind: input, shape index: {}]   ;;  %s105_s1 = inlined_call_operand.vmem [shape: f32[1,8,1], index: 1, kind: output, shape index: {}]  }
   0x1   :  { %s17_s7 = sshll.u32 %s77_s6, 4  ;;  %s53_s10 = scalar_lea.hbm %s104_s0, 256  ;;  %s18_s7 = int_to_ptr.vmem [resolvable:$true] %s17_s7 }
   0x2   :  { %p54_p0 = scmp.ne.s32.totalorder %s104_s0, %s53_s10  ;;  %p57_p1 = scmp.lt.u32.totalorder %s53_s10, %s104_s0 }
   0x4   :  { %p59_p2 = pnand %p57_p1, %p54_p0 }
   0x6   :  { %62 = shalt.err (!%p59_p2)
}
   0x7   :  { %s63_s15 = scalar_lea.vmem %s18_s7, 256  ;;  %p68_p4 = scmp.lt.s32.totalorder %s18_s7, %s18_s7 }
   0x8   :  { %p64_p3 = scmp.ne.s32.totalorder %s18_s7, %s63_s15  ;;  %p69_p5 = scmp.lt.s32.totalorder %s63_s15, %s63_s15 }
   0xa   :  { %p70_p6 = por %p69_p5, %p68_p4 }
   0xc   :  { %p71_p7 = pnand %p70_p6, %p64_p3 }
   0xe   :  { %74 = shalt.err (!%p71_p7)
}
   0xf   :  { %20 = dma.hbm_to_vmem [thread:$0]  %s104_s0, 256, %s18_s7, [#allocation4]  }
  0x10   :  { %75 = dma.done.wait [#allocation4], 256  }
  0x11   :  { %76 = vsyncadd [#allocation4], 4294967040  ;;  %vm30_vm0 = vcmask 7168   ;;  %v78_v0 = vmov 0.0   ;;  %v33_v1 = vld [vmem:[#allocation3] sm:$0xff]  ;;  %v34_v2 = vld [vmem:[#allocation3 + $0x8] sm:$0xff] }
  0x12   :  { %31 = vst.msk [vmem:[#allocation2] sm:$0xff] %vm30_vm0, %v78_v0  ;;  %v35_v3 = vadd.f32 %v34_v2, %v33_v1 }
  0x14   :  { %36 = vadd.xlane.f32.xlu0 %v35_v3 }
  0x19   :  { %v32_v4 = vld [vmem:[#allocation2] sm:$0xff] }
  0xa1   :  { %v37_v5 = vpop.xlane.xlu0 %36 }
  0xa2   :  { %v38_v6 = vadd.f32 %v37_v5, %v32_v4 }
  0xa4   :  { %40 = vst.msk [vmem:[#allocation2] sm:$0xff] %vm30_vm0, %v38_v6 }
  0xab   :  { %v44_v7 = vld [vmem:[#allocation2] sm:$0xff] }
  0xac   :  { %45 = vst.msk [vmem:[%s105_s1] sm:$0xff] %vm30_vm0, %v44_v7 }
  0xad   :  { %50 = vsyncpa [#allocation4], 1 }

</bundles_post_ra>
